<compile_context>
chip_gen: v5e
topology: v5e:2x2
jax: 0.10.0
libtpu: 0.0.40
codegen_flags: <defaults>
</compile_context>

<pallas_src>
import functools

import jax
import jax.numpy as jnp
import numpy as np
from jax import lax
from jax.experimental import pallas as pl
from jax.experimental.pallas import tpu as pltpu


# ----------------------------- hardware / tiling helpers ----------------------------------------

@functools.lru_cache(maxsize=None)
def _vmem_limit_bytes(frac=0.7, cap=96 * 1024 * 1024, floor=32 * 1024 * 1024):
    """Generation-aware scoped-VMEM limit (never the full physical VMEM of the chip)."""
    phys = None
    try:
        info_fn = getattr(pltpu, "get_tpu_info", None)
        if info_fn is not None:
            phys = getattr(info_fn(), "vmem_capacity_bytes", None)
    except Exception:
        phys = None
    if not phys:
        phys = 64 * 1024 * 1024  # conservative default: v7x per-TensorCore physical VMEM
    return int(max(floor, min(int(phys * frac), cap)))


@functools.lru_cache(maxsize=None)
def _exp_dtype():
    """bf16 exponent on v6e/v7x (bf16 EUP path), f32 on v5e and older."""
    try:
        kind = jax.devices()[0].device_kind.lower()
    except Exception:
        return jnp.float32
    if any(tag in kind for tag in ("v2", "v3", "v4", "v5")):
        return jnp.float32
    return jnp.bfloat16


def _pick_tile(dim, target, mult):
    """Largest tile <= target that divides dim and is a multiple of `mult`; else full dim."""
    if dim <= target:
        return dim
    t = (target // mult) * mult
    while t >= mult:
        if dim % t == 0:
            return t
        t -= mult
    return dim


def _pick_head_block(n_head, head_dim):
    """Smallest head-group size whose channel width is lane-aligned (mult of 128); else all heads."""
    for hb in range(1, n_head + 1):
        if n_head % hb == 0 and (hb * head_dim) % 128 == 0:
            return hb
    return n_head


# ----------------------------- linear kernels: y = x @ Wt + b -----------------------------------

_RESIDENT_WEIGHT_BYTES = 16 * 1024 * 1024  # w_qkv_t for Whisper-large (1280x3840 bf16) ~ 9.8 MB


def _linear_resident_kernel(x_ref, w_ref, b_ref, o_ref):
    # Whole weight lives in VMEM; single MXU contraction per M-tile, f32 accumulate.
    o_ref[...] = (jnp.dot(x_ref[...], w_ref[...], preferred_element_type=jnp.float32)
                  + b_ref[...]).astype(o_ref.dtype)


def _linear_resident(x2d, w_t, b2d, *, out_dtype, tm):
    M, K = x2d.shape
    _, N = w_t.shape
    tm = _pick_tile(M, tm, 8)
    return pl.pallas_call(
        _linear_resident_kernel,
        out_shape=jax.ShapeDtypeStruct((M, N), out_dtype),
        grid=(M // tm,),
        in_specs=[
            pl.BlockSpec((tm, K), lambda i: (i, 0)),
            pl.BlockSpec((K, N), lambda i: (0, 0)),   # weight resident across the M grid
            pl.BlockSpec((1, N), lambda i: (0, 0)),
        ],
        out_specs=pl.BlockSpec((tm, N), lambda i: (i, 0)),
        compiler_params=pltpu.CompilerParams(
            dimension_semantics=("parallel",),
            vmem_limit_bytes=_vmem_limit_bytes()),
    )(x2d, w_t, b2d)


def _linear_tiled_kernel(x_ref, w_ref, b_ref, o_ref, acc_ref):
    @pl.when(pl.program_id(2) == 0)
    def _():
        acc_ref[...] = jnp.zeros_like(acc_ref)

    acc_ref[...] += jnp.dot(x_ref[...], w_ref[...], preferred_element_type=jnp.float32)

    @pl.when(pl.program_id(2) == pl.num_programs(2) - 1)
    def _():
        o_ref[...] = (acc_ref[...] + b_ref[...]).astype(o_ref.dtype)


def _linear_tiled(x2d, w_t, b2d, *, out_dtype, tm, tn, tk):
    M, K = x2d.shape
    _, N = w_t.shape
    tm = _pick_tile(M, tm, 8)
    tn = _pick_tile(N, tn, 128)
    tk = _pick_tile(K, tk, 128)
    return pl.pallas_call(
        _linear_tiled_kernel,
        out_shape=jax.ShapeDtypeStruct((M, N), out_dtype),
        grid=(M // tm, N // tn, K // tk),
        in_specs=[
            pl.BlockSpec((tm, tk), lambda i, j, k: (i, k)),
            pl.BlockSpec((tk, tn), lambda i, j, k: (k, j)),
            pl.BlockSpec((1, tn), lambda i, j, k: (0, j)),
        ],
        out_specs=pl.BlockSpec((tm, tn), lambda i, j, k: (i, j)),
        scratch_shapes=[pltpu.VMEM((tm, tn), jnp.float32)],
        compiler_params=pltpu.CompilerParams(
            dimension_semantics=("parallel", "parallel", "arbitrary"),
            vmem_limit_bytes=_vmem_limit_bytes()),
    )(x2d, w_t, b2d)


def linear(x2d, w_t, b, *, out_dtype=jnp.float32, tm=512, tn=512, tk=512):
    """x2d: (M, K), w_t: (K, N) pre-transposed weights, b: (N,)."""
    _, K = x2d.shape
    _, N = w_t.shape
    b2d = b.reshape(1, N).astype(jnp.float32)
    w_bytes = K * N * jnp.dtype(w_t.dtype).itemsize
    if w_bytes <= _RESIDENT_WEIGHT_BYTES:
        return _linear_resident(x2d, w_t, b2d, out_dtype=out_dtype, tm=tm)
    return _linear_tiled(x2d, w_t, b2d, out_dtype=out_dtype, tm=min(tm, 256), tn=tn, tk=tk)


# ----------------------------- attention core kernel --------------------------------------------
# grid = (batch, head_group, query_tile). Inputs are two views of the fused qkv tensor
# (per-group channel order [q_g | k_g | v_g]):
#   q slab  : (1, tq, 3*hbd) — only the query rows of this tile
#   kv slab : (1,  T, 3*hbd) — full key/value rows (block index constant across query tiles)
# Outputs:
#   wv block (1, tq, hbd)       into the final lane-dense (B, T, D) layout
#   qk block (1, hb, tq, T) f32 scores incl. mask (only when return_qk=True)

def _attn_kernel(q_ref, kv_ref, wv_ref, *qk_refs, hb, head_dim, causal, tq, exp_dtype):
    qk_ref = qk_refs[0] if qk_refs else None
    T = kv_ref.shape[1]
    hbd = hb * head_dim

    # Load each group's q/k/v slab once; heads are sliced in-vreg below.
    q_all = q_ref[0, :, :hbd]                   # (tq, hbd) bf16
    k_all = kv_ref[0, :, hbd:2 * hbd]           # (T,  hbd) bf16
    v_all = kv_ref[0, :, 2 * hbd:3 * hbd]       # (T,  hbd) bf16

    if causal:
        row0 = pl.program_id(2) * tq
        row = lax.broadcasted_iota(jnp.int32, (tq, T), 0) + row0
        col = lax.broadcasted_iota(jnp.int32, (tq, T), 1)
        keep = col <= row                        # hoisted out of the head loop

    outs = []
    for i in range(hb):                          # statically unrolled over heads of this group
        sl = slice(i * head_dim, (i + 1) * head_dim)
        q = q_all[:, sl]
        k = k_all[:, sl]
        v = v_all[:, sl]

        # q @ k.T without an explicit transpose (contract last dims on the MXU).
        s = lax.dot_general(q, k, (((1,), (1,)), ((), ())),
                            preferred_element_type=jnp.float32)   # (tq, T) f32
        if causal:
            s = jnp.where(keep, s, -jnp.inf)
        if qk_ref is not None:
            qk_ref[0, i] = s.astype(qk_ref.dtype)

        # softmax: exponent in exp_dtype (bf16 on v6e/v7x), row-sum and scale in f32,
        # reciprocal on the EUP instead of a VPU divide.
        m = jnp.max(s, axis=-1, keepdims=True)
        e = jnp.exp((s - m).astype(exp_dtype)).astype(jnp.float32)
        p = e * pl.reciprocal(jnp.sum(e, axis=-1, keepdims=True), approx=True)

        outs.append(jnp.dot(p.astype(jnp.bfloat16), v, preferred_element_type=jnp.float32))

    # Single lane-dense store of the whole group's output block.
    if hb == 1:
        wv_ref[0] = outs[0].astype(wv_ref.dtype)
    elif head_dim % 64 == 0:
        wv_ref[0] = jnp.concatenate(outs, axis=-1).astype(wv_ref.dtype)
    else:
        # TODO(synk): heads narrower than 64 lanes keep per-head stores; consider a padded layout.
        for i, o in enumerate(outs):
            wv_ref[0, :, i * head_dim:(i + 1) * head_dim] = o.astype(wv_ref.dtype)


def attention_core(qkv, n_head, hb, head_dim, causal, *, return_qk=True, qk_dtype=jnp.float32):
    B, T, threeD = qkv.shape
    D = threeD // 3
    n_g = n_head // hb
    hbd = hb * head_dim
    tq = _pick_tile(T, 256, 8)      # query tiling keeps (tq,T) intermediates + qk block in VMEM
    nq = T // tq

    kernel = functools.partial(_attn_kernel, hb=hb, head_dim=head_dim, causal=causal,
                               tq=tq, exp_dtype=_exp_dtype())

    out_shape = [jax.ShapeDtypeStruct((B, T, D), jnp.bfloat16)]
    out_specs = [pl.BlockSpec((1, tq, hbd), lambda b, g, t: (b, t, g))]
    if return_qk:
        out_shape.append(jax.ShapeDtypeStruct((B, n_head, T, T), qk_dtype))
        out_specs.append(pl.BlockSpec((1, hb, tq, T), lambda b, g, t: (b, g, t, 0)))

    res = pl.pallas_call(
        kernel,
        out_shape=tuple(out_shape),
        grid=(B, n_g, nq),
        in_specs=[
            # query rows of this tile (includes this group's k/v channels too — small slab)
            pl.BlockSpec((1, tq, 3 * hbd), lambda b, g, t: (b, t, g)),
            # full-T k/v slab; block index independent of the query-tile axis → fetched once per (b,g)
            pl.BlockSpec((1, T, 3 * hbd), lambda b, g, t: (b, 0, g)),
        ],
        out_specs=tuple(out_specs),
        compiler_params=pltpu.CompilerParams(
            dimension_semantics=("parallel", "parallel", "parallel"),
            vmem_limit_bytes=_vmem_limit_bytes()),
    )(qkv, qkv)

    if return_qk:
        wv, qk = res
        return wv, qk
    (wv,) = res
    return wv, None


# ----------------------------- parameter prep (run ONCE at model init) --------------------------

def prepare_params(params, n_head):
    """Stack q/k/v weights per head-group, fold the Dh**-0.5 scale into q, pre-transpose for MXU."""
    D = params["wq"].shape[0]
    Dh = D // n_head
    hb = _pick_head_block(n_head, Dh)
    n_g = n_head // hb
    hbd = hb * Dh
    scale = Dh ** -0.5

    wq = params["wq"] * scale
    bq = params["bq"] * scale
    w_rows, b_rows = [], []
    for g in range(n_g):
        sl = slice(g * hbd, (g + 1) * hbd)
        w_rows += [wq[sl], params["wk"][sl], params["wv"][sl]]
        b_rows += [bq[sl], jnp.zeros((hbd,), jnp.float32), params["bv"][sl]]

    return {
        "w_qkv_t": jnp.concatenate(w_rows, axis=0).T.astype(jnp.bfloat16),   # (D, 3D)
        "b_qkv": jnp.concatenate(b_rows, axis=0).astype(jnp.float32),        # (3D,)
        "wo_t": params["wo"].T.astype(jnp.bfloat16),                         # (D, D)
        "bo": params["bo"].astype(jnp.float32),
        "n_head": n_head, "hb": hb, "Dh": Dh,
    }


# ----------------------------- Full MultiHeadAttention forward ----------------------------------

def multi_head_attention(x, prep, *, causal=False, return_qk=True, out_dtype=jnp.float32):
    B, T, D = x.shape

    x2d = x.reshape(B * T, D).astype(jnp.bfloat16)
    qkv = linear(x2d, prep["w_qkv_t"], prep["b_qkv"],
                 out_dtype=jnp.bfloat16).reshape(B, T, 3 * D)

    wv, qk = attention_core(qkv, prep["n_head"], prep["hb"], prep["Dh"], causal,
                            return_qk=return_qk)

    out = linear(wv.reshape(B * T, D), prep["wo_t"], prep["bo"],
                 out_dtype=out_dtype).reshape(B, T, D)
    return out, qk


# ----------------------------- Pure-JAX f32 reference -------------------------------------------

def ref_mha(x, params, n_head, mask):
    B, T, D = x.shape
    Dh = D // n_head
    scale = Dh ** (-0.25)
    q = x @ params["wq"].T + params["bq"]
    k = x @ params["wk"].T
    v = x @ params["wv"].T + params["bv"]
    qh = q.reshape(B, T, n_head, Dh).transpose(0, 2, 1, 3) * scale
    kh = k.reshape(B, T, n_head, Dh).transpose(0, 2, 3, 1) * scale
    vh = v.reshape(B, T, n_head, Dh).transpose(0, 2, 1, 3)
    qk = (qh @ kh).astype(jnp.float32)
    if mask is not None:
        qk = qk + mask[:T, :T]
    w = jax.nn.softmax(qk, axis=-1).astype(q.dtype)
    wv = (w @ vh).transpose(0, 2, 1, 3).reshape(B, T, D)
    return wv @ params["wo"].T + params["bo"], qk


if __name__ == "__main__":
    # Small but Whisper-structured: head_dim = 64 (same as every Whisper model size).
    B, T, D, H = 2, 8, 128, 2  # batch, n_ctx, n_state, n_head

    key = jax.random.PRNGKey(0)
    keys = jax.random.split(key, 8)
    s = 0.05
    params = {
        "wq": jax.random.normal(keys[0], (D, D), jnp.float32) * s,
        "bq": jax.random.normal(keys[1], (D,), jnp.float32) * s,
        "wk": jax.random.normal(keys[2], (D, D), jnp.float32) * s,
        "wv": jax.random.normal(keys[3], (D, D), jnp.float32) * s,
        "bv": jax.random.normal(keys[4], (D,), jnp.float32) * s,
        "wo": jax.random.normal(keys[5], (D, D), jnp.float32) * s,
        "bo": jax.random.normal(keys[6], (D,), jnp.float32) * s,
    }
    x = jax.random.normal(keys[7], (B, T, D), jnp.float32)

    prep = prepare_params(params, H)  # hoisted: runs once at init, not per forward

    # Decoder-style (causal) path — mask generated in-kernel, qk scores returned (torch semantics).
    out, qk = multi_head_attention(x, prep, causal=True, return_qk=True)
    out, qk = jax.block_until_ready((out, qk))
    causal_mask = jnp.triu(jnp.full((T, T), -jnp.inf, jnp.float32), k=1)
    out_ref, qk_ref = ref_mha(x, params, H, causal_mask)
    np.testing.assert_allclose(np.asarray(out), np.asarray(out_ref), rtol=2e-2, atol=2e-2)
    np.testing.assert_allclose(np.asarray(qk), np.asarray(qk_ref), rtol=2e-2, atol=2e-2)

    # Encoder-style (no mask) path with scores.
    out2, qk2 = multi_head_attention(x, prep, causal=False, return_qk=True)
    out2, qk2 = jax.block_until_ready((out2, qk2))
    out2_ref, qk2_ref = ref_mha(x, params, H, None)
    np.testing.assert_allclose(np.asarray(out2), np.asarray(out2_ref), rtol=2e-2, atol=2e-2)
    np.testing.assert_allclose(np.asarray(qk2), np.asarray(qk2_ref), rtol=2e-2, atol=2e-2)

    # Encoder-style path with the qk writeback elided (perf path).
    out3, qk3 = multi_head_attention(x, prep, causal=False, return_qk=False)
    out3 = jax.block_until_ready(out3)
    assert qk3 is None
    np.testing.assert_allclose(np.asarray(out3), np.asarray(out2_ref), rtol=2e-2, atol=2e-2)

    print("KERNEL_OK")
</pallas_src>

<mosaic_0001>
module attributes {stable_mosaic.version = 11 : i64} {
  func.func @_linear_resident_kernel(%arg0: i32, %arg1: memref<16x128xbf16, #tpu.memory_space<vmem>>, %arg2: memref<128x384xbf16, #tpu.memory_space<vmem>>, %arg3: memref<1x384xf32, #tpu.memory_space<vmem>>, %arg4: memref<16x384xbf16, #tpu.memory_space<vmem>>) attributes {dimension_semantics = [#tpu.dimension_semantics<parallel>], iteration_bounds = array<i64: 1>, scalar_prefetch = 0 : i64, scratch_operands = 0 : i64, tpu.core_type = #tpu.core_type<tc>, window_params = [{transform_indices = @transform_0, window_bounds = array<i64: 16, 128>}, {pipeline_mode = #tpu.pipeline_mode<synchronous>, transform_indices = @transform_1, window_bounds = array<i64: 128, 384>}, {pipeline_mode = #tpu.pipeline_mode<synchronous>, transform_indices = @transform_2, window_bounds = array<i64: 1, 384>}, {transform_indices = @transform_3, window_bounds = array<i64: 16, 384>}]} {
    %c0 = arith.constant 0 : index
    %c0_0 = arith.constant 0 : index
    %0 = vector.load %arg1[%c0, %c0_0] : memref<16x128xbf16, #tpu.memory_space<vmem>>, vector<16x128xbf16>
    %c0_1 = arith.constant 0 : index
    %c0_2 = arith.constant 0 : index
    %1 = vector.load %arg2[%c0_1, %c0_2] : memref<128x384xbf16, #tpu.memory_space<vmem>>, vector<128x384xbf16>
    %cst = arith.constant dense<0.000000e+00> : vector<16x384xf32>
    %2 = tpu.matmul %0, %1, %cst {dimension_numbers = #tpu.dot_dimension_numbers<[1], [0], [0], [1], [0, 0, 1, 1], [], []>} : vector<16x128xbf16>, vector<128x384xbf16>, vector<16x384xf32> -> vector<16x384xf32>
    %c0_3 = arith.constant 0 : index
    %c0_4 = arith.constant 0 : index
    %3 = vector.load %arg3[%c0_3, %c0_4] : memref<1x384xf32, #tpu.memory_space<vmem>>, vector<1x384xf32>
    %4 = vector.broadcast %3 : vector<1x384xf32> to vector<16x384xf32>
    %5 = arith.addf %2, %4 : vector<16x384xf32>
    %6 = arith.truncf %5 : vector<16x384xf32> to vector<16x384xbf16>
    %c0_5 = arith.constant 0 : index
    %c0_6 = arith.constant 0 : index
    %7 = vector.load %arg4[%c0_5, %c0_6] : memref<16x384xbf16, #tpu.memory_space<vmem>>, vector<16x384xbf16>
    tpu.vector_store %arg4[%c0_5, %c0_6], %6 {strides = array<i32>} : memref<16x384xbf16, #tpu.memory_space<vmem>>, vector<16x384xbf16>,
    return
  }
  func.func @transform_0(%arg0: i32) -> (i32, i32) {
    %c0_i32 = arith.constant 0 : i32
    %c0_i32_0 = arith.constant 0 : i32
    return %arg0, %c0_i32 : i32, i32
  }
  func.func @transform_1(%arg0: i32) -> (i32, i32) {
    %c0_i32 = arith.constant 0 : i32
    %c0_i32_0 = arith.constant 0 : i32
    %c0_i32_1 = arith.constant 0 : i32
    return %c0_i32, %c0_i32_0 : i32, i32
  }
  func.func @transform_2(%arg0: i32) -> (i32, i32) {
    %c0_i32 = arith.constant 0 : i32
    %c0_i32_0 = arith.constant 0 : i32
    %c0_i32_1 = arith.constant 0 : i32
    return %c0_i32, %c0_i32_0 : i32, i32
  }
  func.func @transform_3(%arg0: i32) -> (i32, i32) {
    %c0_i32 = arith.constant 0 : i32
    %c0_i32_0 = arith.constant 0 : i32
    return %arg0, %c0_i32 : i32, i32
  }
}

</mosaic_0001>

<bundles_post_ra>
// kernel: tpu_custom_call.1
= control target key start
LH: loop header
LB: loop body
LE: loop exit
PB: predicated region body
PF: predicated region fallthrough
CT: control target
= control target key end

     0   :  { %8 = vsyncpa [#allocation3], 0  ;;  %s587_s0 = inlined_call_operand.hbm [shape: bf16[16,128], index: 0, kind: input, shape index: {}]   ;;  %s588_s1 = inlined_call_operand.hbm [shape: bf16[128,384], index: 1, kind: input, shape index: {}]   ;;  %s589_s2 = inlined_call_operand.hbm [shape: f32[1,384], index: 2, kind: input, shape index: {}]   ;;  %s590_s3 = inlined_call_operand.hbm [shape: bf16[16,384], index: 3, kind: output, shape index: {}]  }
   0x1   :  { %9 = vsyncpa [#allocation6], 0  ;;  %s28_s14 = sshll.u32 %s588_s1, 4  ;;  %s29_s14 = int_to_ptr.hbm [resolvable:$true] %s28_s14 }
   0x2   :  { %10 = vsyncpa [#allocation4], 0  ;;  %s541_s15 = smov [#allocation5]   ;;  %s15_s19 = sshll.u32 %s587_s0, 4  ;;  %s16_s19 = int_to_ptr.hbm [resolvable:$true] %s15_s19 }
   0x3   :  { %s30_s16 = sshll.u32 %s541_s15, 4  ;;  %s542_s20 = smov 192   ;;  %s31_s16 = int_to_ptr.vmem [resolvable:$true] %s30_s16 }
   0x4   :  { %s543_s21 = smov 12   ;;  %s544_s22 = smov [#allocation2]  }
   0x5   :  { %36 = dma.hbm_to_vmem [thread:$0]  %s29_s14, 3072, %s31_s16, [#allocation6], %s542_s20, %s542_s20, %s543_s21  }
   0x6   :  { %s17_s23 = sshll.u32 %s544_s22, 4  ;;  %s545_s1 = smov 64   ;;  %s18_s23 = int_to_ptr.vmem [resolvable:$true] %s17_s23 }
   0x7   :  { %s546_s24 = smov 4   ;;  %s42_s27 = sshll.u32 %s589_s2, 4  ;;  %s43_s27 = int_to_ptr.hbm [resolvable:$true] %s42_s27 }
   0x8   :  { %23 = dma.hbm_to_vmem [thread:$0]  %s16_s19, 128, %s18_s23, [#allocation3], %s545_s1, %s545_s1, %s546_s24  }
   0x9   :  { %s547_s28 = smov [#allocation7]  }
   0xa   :  { %s44_s0 = sshll.u32 %s547_s28, 4  ;;  %s45_s0 = int_to_ptr.vmem [resolvable:$true] %s44_s0 }
   0xb   :  { %47 = dma.hbm_to_vmem [thread:$0]  %s43_s27, 48, %s45_s0, [#allocation6]  }
   0xc   :  { %535 = dma.done.wait [#allocation3], 128  }
   0xd   :  { %536 = vsyncadd [#allocation3], 4294967168 }
   0xe   :  { %537 = dma.done.wait [#allocation6], 3120  }
   0xf   :  { %538 = vsyncadd [#allocation6], 4294964176  ;;  %v396_v0 = vld [vmem:[#allocation5 + $0xa8] sm:$0xf]  ;;  %v429_v1 = vld [vmem:[#allocation5 + $0xb0] sm:$0xf0] }
  0x10   :  { %v428_v2 = vld [vmem:[#allocation5 + $0xac] sm:$0xf]  ;;  %v397_v3 = vor.u32 %v429_v1, %v396_v0  ;;  %v398_v4 = vld [vmem:[#allocation5 + $0xb4] sm:$0xf0]  ;;  %v404_v5 = vld [vmem:[#allocation5 + $0xb0] sm:$0xf] }
  0x11   :  { %v430_v6 = vld [vmem:[#allocation5 + $0xb8] sm:$0xf0]  ;;  %v401_v7 = vor.u32 %v428_v2, %v398_v4  ;;  %v384_v9 = vld [vmem:[#allocation5 + $0x90] sm:$0xf]  ;;  %v425_v11 = vld [vmem:[#allocation5 + $0x94] sm:$0xf] }
  0x12   :  { %v405_v8 = vor.u32 %v430_v6, %v404_v5  ;;  %v426_v10 = vld [vmem:[#allocation5 + $0x98] sm:$0xf0]  ;;  %236 = vmatpush.bf16.msra.mxu0 %v397_v3  ;;  %v386_v13 = vld [vmem:[#allocation5 + $0x9c] sm:$0xf0]  ;;  %v392_v14 = vld [vmem:[#allocation5 + $0x98] sm:$0xf] }
  0x13   :  { %v385_v12 = vor.u32 %v426_v10, %v384_v9  ;;  %v427_v15 = vld [vmem:[#allocation5 + $0xa0] sm:$0xf0]  ;;  %250 = vmatpush.bf16.msra.mxu1 %v401_v7  ;;  %v389_v16 = vor.u32 %v425_v11, %v386_v13  ;;  %v372_v18 = vld [vmem:[#allocation5 + $0x78] sm:$0xf]  ;;  %v422_v20 = vld [vmem:[#allocation5 + $0x7c] sm:$0xf] }
  0x14   :  { %264 = vmatpush.bf16.msra.mxu2 %v405_v8  ;;  %v393_v17 = vor.u32 %v427_v15, %v392_v14  ;;  %v423_v19 = vld [vmem:[#allocation5 + $0x80] sm:$0xf0]  ;;  %v374_v21 = vld [vmem:[#allocation5 + $0x84] sm:$0xf0]  ;;  %v380_v22 = vld [vmem:[#allocation5 + $0x80] sm:$0xf] }
  0x15   :  { %v424_v23 = vld [vmem:[#allocation5 + $0x88] sm:$0xf0]  ;;  %v373_v24 = vor.u32 %v423_v19, %v372_v18  ;;  %v377_v25 = vor.u32 %v422_v20, %v374_v21  ;;  %v360_v27 = vld [vmem:[#allocation5 + $0x60] sm:$0xf]  ;;  %v419_v29 = vld [vmem:[#allocation5 + $0x64] sm:$0xf] }
  0x16   :  { %237 = vmatpush.bf16.msra.mxu0 %v385_v12  ;;  %v381_v26 = vor.u32 %v424_v23, %v380_v22  ;;  %v420_v28 = vld [vmem:[#allocation5 + $0x68] sm:$0xf0]  ;;  %v362_v30 = vld [vmem:[#allocation5 + $0x6c] sm:$0xf0]  ;;  %v368_v31 = vld [vmem:[#allocation5 + $0x68] sm:$0xf] }
  0x17   :  { %251 = vmatpush.bf16.msra.mxu1 %v389_v16  ;;  %v421_v32 = vld [vmem:[#allocation5 + $0x70] sm:$0xf0]  ;;  %v361_v33 = vor.u32 %v420_v28, %v360_v27  ;;  %v365_v34 = vor.u32 %v419_v29, %v362_v30  ;;  %v348_v36 = vld [vmem:[#allocation5 + $0x48] sm:$0xf]  ;;  %v416_v38 = vld [vmem:[#allocation5 + $0x4c] sm:$0xf] }
  0x18   :  { %265 = vmatpush.bf16.msra.mxu2 %v393_v17  ;;  %v369_v35 = vor.u32 %v421_v32, %v368_v31  ;;  %v417_v37 = vld [vmem:[#allocation5 + $0x50] sm:$0xf0]  ;;  %v350_v39 = vld [vmem:[#allocation5 + $0x54] sm:$0xf0]  ;;  %v356_v40 = vld [vmem:[#allocation5 + $0x50] sm:$0xf] }
  0x19   :  { %v418_v41 = vld [vmem:[#allocation5 + $0x58] sm:$0xf0]  ;;  %v349_v42 = vor.u32 %v417_v37, %v348_v36  ;;  %v353_v43 = vor.u32 %v416_v38, %v350_v39  ;;  %v336_v45 = vld [vmem:[#allocation5 + $0x30] sm:$0xf]  ;;  %v413_v47 = vld [vmem:[#allocation5 + $0x34] sm:$0xf] }
  0x1a   :  { %238 = vmatpush.bf16.msra.mxu0 %v373_v24  ;;  %v357_v44 = vor.u32 %v418_v41, %v356_v40  ;;  %v414_v46 = vld [vmem:[#allocation5 + $0x38] sm:$0xf0]  ;;  %v338_v48 = vld [vmem:[#allocation5 + $0x3c] sm:$0xf0]  ;;  %v344_v49 = vld [vmem:[#allocation5 + $0x38] sm:$0xf] }
  0x1b   :  { %252 = vmatpush.bf16.msra.mxu1 %v377_v25  ;;  %v415_v50 = vld [vmem:[#allocation5 + $0x40] sm:$0xf0]  ;;  %v337_v51 = vor.u32 %v414_v46, %v336_v45  ;;  %v341_v52 = vor.u32 %v413_v47, %v338_v48  ;;  %v324_v54 = vld [vmem:[#allocation5 + $0x18] sm:$0xf]  ;;  %v410_v56 = vld [vmem:[#allocation5 + $0x1c] sm:$0xf] }
  0x1c   :  { %266 = vmatpush.bf16.msra.mxu2 %v381_v26  ;;  %v345_v53 = vor.u32 %v415_v50, %v344_v49  ;;  %v411_v55 = vld [vmem:[#allocation5 + $0x20] sm:$0xf0]  ;;  %v326_v57 = vld [vmem:[#allocation5 + $0x24] sm:$0xf0]  ;;  %v332_v58 = vld [vmem:[#allocation5 + $0x20] sm:$0xf] }
  0x1d   :  { %v412_v59 = vld [vmem:[#allocation5 + $0x28] sm:$0xf0]  ;;  %v325_v60 = vor.u32 %v411_v55, %v324_v54  ;;  %v329_v61 = vor.u32 %v410_v56, %v326_v57  ;;  %v312_v63 = vld [vmem:[#allocation5] sm:$0xf]  ;;  %v407_v1 = vld [vmem:[#allocation5 + $0x4] sm:$0xf] }
  0x1e   :  { %239 = vmatpush.bf16.msra.mxu0 %v361_v33  ;;  %v333_v62 = vor.u32 %v412_v59, %v332_v58  ;;  %v408_v0 = vld [vmem:[#allocation5 + $0x8] sm:$0xf0]  ;;  %v314_v2 = vld [vmem:[#allocation5 + $0xc] sm:$0xf0]  ;;  %v320_v3 = vld [vmem:[#allocation5 + $0x8] sm:$0xf] }
  0x1f   :  { %253 = vmatpush.bf16.msra.mxu1 %v365_v34  ;;  %v409_v4 = vld [vmem:[#allocation5 + $0x10] sm:$0xf0]  ;;  %v313_v5 = vor.u32 %v408_v0, %v312_v63  ;;  %v317_v6 = vor.u32 %v407_v1, %v314_v2  ;;  %v406_v8 = vld [vmem:[#allocation2] sm:$0xff]  ;;  %v94_v9 = vld [vmem:[#allocation7] sm:$0x7]  ;;  %s548_s2 = smov [#allocation8]  }
  0x20   :  { %267 = vmatpush.bf16.msra.mxu2 %v369_v35  ;;  %v321_v7 = vor.u32 %v409_v4, %v320_v3  ;;  %v96_v10 = vperm.slane %v94_v9, 0  ;;  %v97_v11 = vperm.slane %v94_v9, 1  ;;  %v98_v17 = vperm.slane %v94_v9, 2  ;;  %s290_s29 = sshll.u32 %s548_s2, 4  ;;  %s292_s5 = sshll.u32 %s590_s3, 4  ;;  %s291_s29 = int_to_ptr.vmem [resolvable:$true] %s290_s29  ;;  %s293_s5 = int_to_ptr.hbm [resolvable:$true] %s292_s5 }
  0x22   :  { %240 = vmatpush.bf16.msra.mxu0 %v349_v42 }
  0x23   :  { %254 = vmatpush.bf16.msra.mxu1 %v353_v43 }
  0x24   :  { %268 = vmatpush.bf16.msra.mxu2 %v357_v44 }
  0x26   :  { %241 = vmatpush.bf16.msra.mxu0 %v337_v51 }
  0x27   :  { %255 = vmatpush.bf16.msra.mxu1 %v341_v52 }
  0x28   :  { %269 = vmatpush.bf16.msra.mxu2 %v345_v53 }
  0x2a   :  { %242 = vmatpush.bf16.msra.mxu0 %v325_v60 }
  0x2b   :  { %256 = vmatpush.bf16.msra.mxu1 %v329_v61 }
  0x2c   :  { %270 = vmatpush.bf16.msra.mxu2 %v333_v62 }
  0x2e   :  { %243 = vmatpush.bf16.msra.mxu0 %v313_v5 }
  0x2f   :  { %257 = vmatpush.bf16.msra.mxu1 %v317_v6 }
  0x30   :  { %271 = vmatpush.bf16.msra.mxu2 %v321_v7 }
  0x31   :  { %244 = vmatmul.bf16.vlgmr.msra.gmra.mxu0 %v406_v8 }
  0x32   :  { %258 = vmatmul.bf16.vlgmr.msra.gmra.mxu1 %v406_v8 }
  0x33   :  { %272 = vmatmul.bf16.vlgmr.msra.gmra.mxu2 %v406_v8 }
  0xae   :  { %v245_v12 = vpop.f32.mrf.mxu0 }
  0xaf   :  { %v246_v13 = vadd.f32 %v245_v12, %v96_v10  ;;  %v259_v14 = vpop.f32.mrf.mxu1 }
  0xb0   :  { %v260_v15 = vadd.f32 %v259_v14, %v97_v11 }
  0xb2   :  { %v278_v16 = vpack.c.bf16 %v260_v15, %v246_v13 }
  0xb4   :  { %282 = vst [vmem:[#allocation8] sm:$0xff] %v278_v16 }
  0xb6   :  { %v273_v18 = vpop.f32.mrf.mxu2  ;;  %v247_v20 = vpop.f32.mrf.mxu0 }
  0xb7   :  { %v274_v19 = vadd.f32 %v273_v18, %v98_v17  ;;  %v248_v21 = vadd.f32 %v247_v20, %v96_v10  ;;  %v261_v22 = vpop.f32.mrf.mxu1 }
  0xb8   :  { %v262_v24 = vadd.f32 %v261_v22, %v97_v11 }
  0xb9   :  { %v279_v23 = vpack.c.bf16 %v274_v19, %v274_v19 }
  0xba   :  { %v280_v25 = vpack.c.bf16 %v262_v24, %v248_v21 }
  0xbb   :  { %283 = vst [vmem:[#allocation8 + $0x8] sm:$0xf] %v279_v23 }
  0xbc   :  { %284 = vst [vmem:[#allocation8 + $0xc] sm:$0xff] %v280_v25 }
  0xbe   :  { %v275_v26 = vpop.f32.mrf.mxu2 }
  0xbf   :  { %v276_v27 = vadd.f32 %v275_v26, %v98_v17 }
  0xc1   :  { %v281_v28 = vpack.c.bf16 %v276_v27, %v276_v27 }
  0xc3   :  { %285 = vst [vmem:[#allocation8 + $0x14] sm:$0xf] %v281_v28 }
  0xc4   :  { %298 = dma.vmem_to_hbm [thread:$0]  %s291_s29, 384, %s293_s5, [#allocation4], %s542_s20, %s542_s20, %s543_s21  }
  0xc5   :  { %539 = dma.done.wait [#allocation4], 384  }
  0xc6   :  { %540 = vsyncadd [#allocation4], 4294966912 }
  0xc7   :  { %303 = vsyncpa [#allocation3], 1 }
  0xc8   :  { %304 = vsyncpa [#allocation6], 1 }
  0xc9   :  { %305 = vsyncpa [#allocation4], 1 }

</bundles_post_ra>
